<compile_context>
chip_gen: v7x
topology: tpu7x:2x2x1
jax: 0.10.0
libtpu: 0.0.40
codegen_flags: <defaults>
</compile_context>

<pallas_src>
import functools

import jax
import jax.numpy as jnp
from jax.experimental import pallas as pl
from jax.experimental.pallas import tpu as pltpu


# ----------------------------------------------------------------------------
# Host-side scheduler (pure Python scalar math, identical to the PyTorch class)
# ----------------------------------------------------------------------------
class LinearDecreaseScheduler:
    def __init__(self, start_weight=0.15, max_weight=0.01, num_steps=2000):
        self.orig_weight = start_weight
        self.weight = start_weight
        self.max_weight = max_weight
        if num_steps == 0:
            num_steps = 1
        self.factor = (start_weight - max_weight) / num_steps

    def update(self, it):
        self.weight = self.weight - it * self.factor
        self.weight = min(max(self.weight, self.max_weight), self.orig_weight)
        return self.weight


# ----------------------------------------------------------------------------
# Pallas kernel: weighted 2-class cross-entropy partial sums per image.
# ----------------------------------------------------------------------------
def _wce_kernel(w_ref, logit_ref, tgt_ref, out_ref, num_acc, den_acc,
                *, hw, rows_per_tile, need_mask):
    j = pl.program_id(1)
    R = rows_per_tile

    @pl.when(j == 0)
    def _():
        num_acc[...] = jnp.zeros_like(num_acc)
        den_acc[...] = jnp.zeros_like(den_acc)

    l0 = logit_ref[0, 0].astype(jnp.float32)       # (R, 128)
    l1 = logit_ref[0, 1].astype(jnp.float32)       # (R, 128)
    t = tgt_ref[0]                                 # (R, 128) int32
    is1 = t != 0

    # nll = -log_softmax(x)[target] = softplus(l_other - l_target), stable form.
    diff = l1 - l0
    absd = jnp.abs(diff)
    tail = jnp.log(1.0 + jnp.exp(-absd))           # shared for both classes
    d = jnp.where(is1, -diff, diff)                # l_other - l_target
    nll = jnp.maximum(d, 0.0) + tail

    w0 = w_ref[0]
    w1 = w_ref[1]
    wt = jnp.where(is1, w1, w0)

    if need_mask:
        # Only traced when the last tile can contain padded / stale pixels.
        row = jax.lax.broadcasted_iota(jnp.int32, (R, 128), 0)
        lane = jax.lax.broadcasted_iota(jnp.int32, (R, 128), 1)
        pix = (j * R + row) * 128 + lane
        valid = pix < hw
        wt = jnp.where(valid, wt, 0.0)
        nll = jnp.where(valid, nll, 0.0)           # NaN/garbage safe

    num_acc[...] += wt * nll
    den_acc[...] += wt

    @pl.when(j == pl.num_programs(1) - 1)
    def _():
        # one sublane-group reduce per image; final scalar reduce done in JAX
        out_ref[0, 0] = num_acc[...].reshape(R // 8, 8, 128).sum(axis=0)
        out_ref[0, 1] = den_acc[...].reshape(R // 8, 8, 128).sum(axis=0)


@functools.partial(jax.jit, static_argnames=("tile_rows",))
def weighted_cross_entropy_pallas(logits_nchw, target_nhw, weight_vec, *,
                                  tile_rows=256):
    """F.cross_entropy(input, target, weight=[w0,w1], reduction='mean'), C=2."""
    N, C, H, W = logits_nchw.shape
    assert C == 2, "this kernel implements the 2-class weighted CE of the module"
    assert tile_rows % 8 == 0 and tile_rows >= 8
    HW = H * W
    HW_pad = ((HW + 1023) // 1024) * 1024          # multiple of 8*128

    logits = logits_nchw.reshape(N, C, HW)          # zero-copy view
    target = target_nhw.reshape(N, HW).astype(jnp.int32)
    if HW_pad != HW:                                # rare fallback: tiny pad
        pad = HW_pad - HW
        logits = jnp.pad(logits, ((0, 0), (0, 0), (0, pad)))
        target = jnp.pad(target, ((0, 0), (0, pad)))

    rows = HW_pad // 128                            # multiple of 8
    R = min(tile_rows, rows)                        # multiple of 8
    n_blk = pl.cdiv(rows, R)
    need_mask = (HW % (R * 128)) != 0               # padded or partial tail?

    logits = logits.reshape(N, C, rows, 128)        # zero-copy view
    target = target.reshape(N, rows, 128)

    kernel = functools.partial(_wce_kernel, hw=HW, rows_per_tile=R,
                               need_mask=need_mask)

    out = pl.pallas_call(
        kernel,
        out_shape=jax.ShapeDtypeStruct((N, 2, 8, 128), jnp.float32),
        grid_spec=pltpu.PrefetchScalarGridSpec(
            num_scalar_prefetch=0,
            grid=(N, n_blk),
            in_specs=[
                # class weights [w, 1-w] live in SMEM
                pl.BlockSpec(memory_space=pltpu.MemorySpace.SMEM),
                # logits: both classes for this pixel tile, native dtype
                pl.BlockSpec((1, 2, R, 128), lambda n, j: (n, 0, j, 0)),
                # targets
                pl.BlockSpec((1, R, 128), lambda n, j: (n, j, 0)),
            ],
            out_specs=pl.BlockSpec((1, 2, 8, 128), lambda n, j: (n, 0, 0, 0)),
            scratch_shapes=[
                pltpu.VMEM((R, 128), jnp.float32),   # weighted-nll accumulator
                pltpu.VMEM((R, 128), jnp.float32),   # weight accumulator
            ],
        ),
        compiler_params=pltpu.CompilerParams(
            dimension_semantics=("parallel", "arbitrary")),
    )(weight_vec.astype(jnp.float32), logits, target)

    num = jnp.sum(out[:, 0])
    den = jnp.sum(out[:, 1])
    # Matches PyTorch: NaN if the total weight is zero.
    return num / den


# ----------------------------------------------------------------------------
# Module-equivalent wrapper
# ----------------------------------------------------------------------------
class ScheduledWeightedCrossEntropyLoss:
    def __init__(self, start_weight=0.01, max_weight=0.5,
                 scheduler=LinearDecreaseScheduler, num_steps=2000):
        self.scheduler = scheduler(start_weight=start_weight,
                                   max_weight=max_weight,
                                   num_steps=num_steps)

    def __call__(self, input_nchw, target_nhw, it, *, tile_rows=256):
        weight = self.scheduler.update(it)           # host scalar math
        weight_tensor = jnp.array([weight, 1.0 - weight], jnp.float32)
        return weighted_cross_entropy_pallas(input_nchw, target_nhw,
                                             weight_tensor, tile_rows=tile_rows)


# ----------------------------------------------------------------------------
# Pure-JAX reference for correctness check
# ----------------------------------------------------------------------------
def _reference_ce(logits_nchw, target_nhw, weight_vec):
    logp = jax.nn.log_softmax(logits_nchw.astype(jnp.float32), axis=1)
    nll = -jnp.take_along_axis(logp, target_nhw[:, None, :, :], axis=1)[:, 0]
    wt = weight_vec[target_nhw]
    return jnp.sum(wt * nll) / jnp.sum(wt)


if __name__ == "__main__":
    base_key = jax.random.PRNGKey(0)

    def run_case(N, H, W, it, tile_rows=256):
        k1, k2 = jax.random.split(jax.random.fold_in(base_key, N * 1000 + H * W))
        logits = jax.random.normal(k1, (N, 2, H, W), dtype=jnp.float32)
        target = jax.random.randint(k2, (N, H, W), 0, 2, dtype=jnp.int32)

        mod = ScheduledWeightedCrossEntropyLoss()    # defaults: start=0.01, max=0.5
        loss = jax.block_until_ready(mod(logits, target, it, tile_rows=tile_rows))

        sched = LinearDecreaseScheduler(start_weight=0.01, max_weight=0.5,
                                        num_steps=2000)
        w = sched.update(it)
        ref = jax.block_until_ready(
            _reference_ce(logits, target, jnp.array([w, 1.0 - w], jnp.float32)))
        assert jnp.allclose(loss, ref, rtol=1e-5, atol=1e-6), (N, H, W, loss, ref)

    run_case(2, 32, 32, it=100)                  # HW % 1024 == 0: zero-copy path
    run_case(2, 16, 16, it=7)                    # small HW: padded-tail + mask path
    run_case(1, 48, 64, it=500, tile_rows=16)    # multi-block grid + partial last block
    print("KERNEL_OK")
</pallas_src>

<mosaic_0001>
module attributes {stable_mosaic.version = 11 : i64} {
  func.func @_wce_kernel(%arg0: i32, %arg1: i32, %arg2: memref<2xf32, #tpu.memory_space<smem>>, %arg3: memref<1x2x8x128xf32, #tpu.memory_space<vmem>>, %arg4: memref<1x8x128xi32, #tpu.memory_space<vmem>>, %arg5: memref<1x2x8x128xf32, #tpu.memory_space<vmem>>, %arg6: memref<8x128xf32, #tpu.memory_space<vmem>>, %arg7: memref<8x128xf32, #tpu.memory_space<vmem>>) attributes {dimension_semantics = [#tpu.dimension_semantics<parallel>, #tpu.dimension_semantics<arbitrary>], iteration_bounds = array<i64: 2, 1>, scalar_prefetch = 0 : i64, scratch_operands = 2 : i64, tpu.core_type = #tpu.core_type<tc>, window_params = [{transform_indices = @transform_0, window_bounds = array<i64: 2>}, {transform_indices = @transform_1, window_bounds = array<i64: 1, 2, 8, 128>}, {transform_indices = @transform_2, window_bounds = array<i64: 1, 8, 128>}, {transform_indices = @transform_3, window_bounds = array<i64: 1, 2, 8, 128>}]} {
    %c0_i32 = arith.constant 0 : i32
    %0 = arith.cmpi eq, %arg1, %c0_i32 : i32
    %1 = arith.extui %0 : i1 to i32
    %c0_i32_0 = arith.constant 0 : i32
    %2 = arith.cmpi ne, %1, %c0_i32_0 : i32
    scf.if %2 {
      %cst_26 = arith.constant 0.000000e+00 : f32
      %40 = vector.broadcast %cst_26 : f32 to vector<8x128xf32>
      %c0_27 = arith.constant 0 : index
      %c0_28 = arith.constant 0 : index
      %41 = vector.load %arg6[%c0_27, %c0_28] : memref<8x128xf32, #tpu.memory_space<vmem>>, vector<8x128xf32>
      tpu.vector_store %arg6[%c0_27, %c0_28], %40 {strides = array<i32>} : memref<8x128xf32, #tpu.memory_space<vmem>>, vector<8x128xf32>,
      %cst_29 = arith.constant 0.000000e+00 : f32
      %42 = vector.broadcast %cst_29 : f32 to vector<8x128xf32>
      %c0_30 = arith.constant 0 : index
      %c0_31 = arith.constant 0 : index
      %43 = vector.load %arg7[%c0_30, %c0_31] : memref<8x128xf32, #tpu.memory_space<vmem>>, vector<8x128xf32>
      tpu.vector_store %arg7[%c0_30, %c0_31], %42 {strides = array<i32>} : memref<8x128xf32, #tpu.memory_space<vmem>>, vector<8x128xf32>,
    } else {
    }
    %c0 = arith.constant 0 : index
    %c0_1 = arith.constant 0 : index
    %c0_2 = arith.constant 0 : index
    %c0_3 = arith.constant 0 : index
    %3 = vector.load %arg3[%c0, %c0_1, %c0_2, %c0_3] : memref<1x2x8x128xf32, #tpu.memory_space<vmem>>, vector<1x1x8x128xf32>
    %4 = vector.shape_cast %3 : vector<1x1x8x128xf32> to vector<8x128xf32>
    %c0_4 = arith.constant 0 : index
    %c1 = arith.constant 1 : index
    %c0_5 = arith.constant 0 : index
    %c0_6 = arith.constant 0 : index
    %5 = vector.load %arg3[%c0_4, %c1, %c0_5, %c0_6] : memref<1x2x8x128xf32, #tpu.memory_space<vmem>>, vector<1x1x8x128xf32>
    %6 = vector.shape_cast %5 : vector<1x1x8x128xf32> to vector<8x128xf32>
    %c0_7 = arith.constant 0 : index
    %c0_8 = arith.constant 0 : index
    %c0_9 = arith.constant 0 : index
    %7 = vector.load %arg4[%c0_7, %c0_8, %c0_9] : memref<1x8x128xi32, #tpu.memory_space<vmem>>, vector<1x8x128xi32>
    %8 = vector.shape_cast %7 : vector<1x8x128xi32> to vector<8x128xi32>
    %c0_i32_10 = arith.constant 0 : i32
    %9 = vector.broadcast %c0_i32_10 : i32 to vector<8x128xi32>
    %10 = arith.cmpi ne, %8, %9 : vector<8x128xi32>
    %11 = arith.subf %6, %4 : vector<8x128xf32>
    %12 = math.absf %11 : vector<8x128xf32>
    %cst = arith.constant 0.000000e+00 : f32
    %13 = vector.broadcast %cst : f32 to vector<8x128xf32>
    %14 = arith.subf %13, %12 : vector<8x128xf32>
    %15 = math.exp %14 : vector<8x128xf32>
    %cst_11 = arith.constant 1.000000e+00 : f32
    %16 = vector.broadcast %cst_11 : f32 to vector<8x128xf32>
    %17 = arith.addf %16, %15 : vector<8x128xf32>
    %18 = math.log %17 : vector<8x128xf32>
    %cst_12 = arith.constant 0.000000e+00 : f32
    %19 = vector.broadcast %cst_12 : f32 to vector<8x128xf32>
    %20 = arith.subf %19, %11 : vector<8x128xf32>
    %21 = arith.select %10, %20, %11 : vector<8x128xi1>, vector<8x128xf32>
    %cst_13 = arith.constant 0.000000e+00 : f32
    %22 = vector.broadcast %cst_13 : f32 to vector<8x128xf32>
    %23 = arith.maximumf %21, %22 : vector<8x128xf32>
    %24 = arith.addf %23, %18 : vector<8x128xf32>
    %c0_14 = arith.constant 0 : index
    %25 = memref.load %arg2[%c0_14] : memref<2xf32, #tpu.memory_space<smem>>
    %c1_15 = arith.constant 1 : index
    %26 = memref.load %arg2[%c1_15] : memref<2xf32, #tpu.memory_space<smem>>
    %27 = vector.broadcast %26 : f32 to vector<8x128xf32>
    %28 = vector.broadcast %25 : f32 to vector<8x128xf32>
    %29 = arith.select %10, %27, %28 : vector<8x128xi1>, vector<8x128xf32>
    %c0_16 = arith.constant 0 : index
    %c0_17 = arith.constant 0 : index
    %30 = vector.load %arg6[%c0_16, %c0_17] : memref<8x128xf32, #tpu.memory_space<vmem>>, vector<8x128xf32>
    %31 = arith.mulf %29, %24 : vector<8x128xf32>
    %32 = arith.addf %30, %31 : vector<8x128xf32>
    %c0_18 = arith.constant 0 : index
    %c0_19 = arith.constant 0 : index
    %33 = vector.load %arg6[%c0_18, %c0_19] : memref<8x128xf32, #tpu.memory_space<vmem>>, vector<8x128xf32>
    tpu.vector_store %arg6[%c0_18, %c0_19], %32 {strides = array<i32>} : memref<8x128xf32, #tpu.memory_space<vmem>>, vector<8x128xf32>,
    %c0_20 = arith.constant 0 : index
    %c0_21 = arith.constant 0 : index
    %34 = vector.load %arg7[%c0_20, %c0_21] : memref<8x128xf32, #tpu.memory_space<vmem>>, vector<8x128xf32>
    %35 = arith.addf %34, %29 : vector<8x128xf32>
    %c0_22 = arith.constant 0 : index
    %c0_23 = arith.constant 0 : index
    %36 = vector.load %arg7[%c0_22, %c0_23] : memref<8x128xf32, #tpu.memory_space<vmem>>, vector<8x128xf32>
    tpu.vector_store %arg7[%c0_22, %c0_23], %35 {strides = array<i32>} : memref<8x128xf32, #tpu.memory_space<vmem>>, vector<8x128xf32>,
    %c0_i32_24 = arith.constant 0 : i32
    %37 = arith.cmpi eq, %arg1, %c0_i32_24 : i32
    %38 = arith.extui %37 : i1 to i32
    %c0_i32_25 = arith.constant 0 : i32
    %39 = arith.cmpi ne, %38, %c0_i32_25 : i32
    scf.if %39 {
      %c0_26 = arith.constant 0 : index
      %c0_27 = arith.constant 0 : index
      %40 = vector.load %arg6[%c0_26, %c0_27] : memref<8x128xf32, #tpu.memory_space<vmem>>, vector<8x128xf32>
      %41 = vector.shape_cast %40 : vector<8x128xf32> to vector<1x8x128xf32>
      %cst_28 = arith.constant dense<0.000000e+00> : vector<8x128xf32>
      %42 = vector.multi_reduction <add>, %41, %cst_28 [0] : vector<1x8x128xf32> to vector<8x128xf32>
      %c0_29 = arith.constant 0 : index
      %c0_30 = arith.constant 0 : index
      %c0_31 = arith.constant 0 : index
      %c0_32 = arith.constant 0 : index
      %43 = vector.load %arg5[%c0_29, %c0_30, %c0_31, %c0_32] : memref<1x2x8x128xf32, #tpu.memory_space<vmem>>, vector<1x1x8x128xf32>
      %44 = vector.shape_cast %43 : vector<1x1x8x128xf32> to vector<8x128xf32>
      %45 = vector.shape_cast %42 : vector<8x128xf32> to vector<1x1x8x128xf32>
      tpu.vector_store %arg5[%c0_29, %c0_30, %c0_31, %c0_32], %45 {strides = array<i32>} : memref<1x2x8x128xf32, #tpu.memory_space<vmem>>, vector<1x1x8x128xf32>,
      %c0_33 = arith.constant 0 : index
      %c0_34 = arith.constant 0 : index
      %46 = vector.load %arg7[%c0_33, %c0_34] : memref<8x128xf32, #tpu.memory_space<vmem>>, vector<8x128xf32>
      %47 = vector.shape_cast %46 : vector<8x128xf32> to vector<1x8x128xf32>
      %cst_35 = arith.constant dense<0.000000e+00> : vector<8x128xf32>
      %48 = vector.multi_reduction <add>, %47, %cst_35 [0] : vector<1x8x128xf32> to vector<8x128xf32>
      %c0_36 = arith.constant 0 : index
      %c1_37 = arith.constant 1 : index
      %c0_38 = arith.constant 0 : index
      %c0_39 = arith.constant 0 : index
      %49 = vector.load %arg5[%c0_36, %c1_37, %c0_38, %c0_39] : memref<1x2x8x128xf32, #tpu.memory_space<vmem>>, vector<1x1x8x128xf32>
      %50 = vector.shape_cast %49 : vector<1x1x8x128xf32> to vector<8x128xf32>
      %51 = vector.shape_cast %48 : vector<8x128xf32> to vector<1x1x8x128xf32>
      tpu.vector_store %arg5[%c0_36, %c1_37, %c0_38, %c0_39], %51 {strides = array<i32>} : memref<1x2x8x128xf32, #tpu.memory_space<vmem>>, vector<1x1x8x128xf32>,
    } else {
    }
    return
  }
  func.func @transform_0(%arg0: i32, %arg1: i32) -> i32 {
    %c0_i32 = arith.constant 0 : i32
    %c0_i32_0 = arith.constant 0 : i32
    return %c0_i32 : i32
  }
  func.func @transform_1(%arg0: i32, %arg1: i32) -> (i32, i32, i32, i32) {
    %c0_i32 = arith.constant 0 : i32
    %c0_i32_0 = arith.constant 0 : i32
    %c0_i32_1 = arith.constant 0 : i32
    return %arg0, %c0_i32, %arg1, %c0_i32_0 : i32, i32, i32, i32
  }
  func.func @transform_2(%arg0: i32, %arg1: i32) -> (i32, i32, i32) {
    %c0_i32 = arith.constant 0 : i32
    %c0_i32_0 = arith.constant 0 : i32
    return %arg0, %arg1, %c0_i32 : i32, i32, i32
  }
  func.func @transform_3(%arg0: i32, %arg1: i32) -> (i32, i32, i32, i32) {
    %c0_i32 = arith.constant 0 : i32
    %c0_i32_0 = arith.constant 0 : i32
    %c0_i32_1 = arith.constant 0 : i32
    %c0_i32_2 = arith.constant 0 : i32
    return %arg0, %c0_i32, %c0_i32_0, %c0_i32_1 : i32, i32, i32, i32
  }
}

</mosaic_0001>

<bundles_post_ra>
// kernel: weighted_cross_entropy_pallas.1
= control target key start
LH: loop header
LB: loop body
LE: loop exit
PB: predicated region body
PF: predicated region fallthrough
CT: control target
= control target key end

     0   :  { %8 = vsyncpa [#allocation5], 0  ;;  %s500_s12 = smov 0   ;;  %s502_s13 = smov 0   ;;  %s562_s0 = inlined_call_operand.vmem [shape: f32[2], index: 0, kind: input, shape index: {}]   ;;  %s563_s1 = inlined_call_operand.vmem [shape: f32[2,2,8,128], index: 1, kind: input, shape index: {}]   ;;  %s564_s2 = inlined_call_operand.vmem [shape: s32[2,8,128], index: 2, kind: input, shape index: {}]   ;;  %s565_s3 = inlined_call_operand.vmem [shape: f32[2,2,8,128], index: 3, kind: output, shape index: {}]  }
   0x1   :  { %s504_s14 = smov 0  }
   0x2 LB: > { %s378_s15 = sadd.s32 4294967295, %s477_s14   ;;  %s26_s16 = sadd.s32 1, %s473_s13  ;;  %s477_s14 = sphi %s504_s14, %s14_s14   ;;  %s473_s13 = sphi %s502_s13, %s569_s13   ;;  %s469_s12 = sphi %s500_s12, %s568_s12  }
   0x3   : > { %p28_p0 = scmp.ge.s32.totalorder %s26_s16, 2  ;;  %p380_p1 = scmp.ge.s32.totalorder %s477_s14, 1 }
   0x4   : > { %p134_p2 = scmp.lt.s32.totalorder %s477_s14, 3  ;;  %p525_p4 = scmp.eq.s32.totalorder %s378_s15, 0 }
   0x5   : > { %s571_s16 = smov (%p28_p0, %s26_s16), 0  ;;  %s147_s21 = sshll.u32 %s562_s0, 4  ;;  %s148_s21 = int_to_ptr.vmem [resolvable:$true] %s147_s21 }
   0x6   : > { %p521_p3 = pnand %p380_p1, %p134_p2  ;;  %s436_s22 = scalar_lea.vmem %s148_s21, 16 }
   0x7   : > { %p437_p7 = scmp.ne.s32.totalorder %s148_s21, %s436_s22  ;;  %p444_p11 = scmp.lt.s32.totalorder %s148_s21, %s148_s21 }
   0x8   : > { %p401_p5 = pneg %p521_p3  ;;  %p445_p12 = scmp.lt.s32.totalorder %s436_s22, %s436_s22 }
   0xa   : > { %p402_p6 = pnand %p525_p4, %p401_p5  ;;  %p446_p13 = por %p445_p12, %p444_p11 }
   0xc   : > { %p438_p8 = pneg %p402_p6 }
   0xe   : > { %p439_p9 = pnand %p438_p8, %p437_p7 }
  0x10   : > { %p440_p10 = pneg %p439_p9 }
  0x12   : > { %p447_p0 = pnand %p446_p13, %p440_p10 }
  0x14   : > { %450 = shalt.err (!%p447_p0)
}
  0x15   : > { %s479_s23 = smov [#allocation4]   ;;  %181 = sbr.rel (%p521_p3) target bundleno = 76 (0x4c), region = 32 }
  0x16   : > { %404 = dma.vmem_to_smem (!%p402_p6), %s148_s21, 16, %s479_s23, [#allocation5]  }
  0x1c   : > { %464 = dma.done.wait (%p525_p4), [#allocation5], 16  }
  0x1d   : > { %466 = vsyncadd (%p525_p4), [#allocation5], 4294967280 }
  0x1e   : > { %187 = sfence }
  0x1f   : > { %p216_p1 = scmp.lt.s32.totalorder %s469_s12, 1  ;;  %s259_s24 = sld [smem:[#allocation4]] }
  0x20   : > { %s391_s25 = sld [smem:[#allocation4 + $0x1]] }
  0x21   : > { %s573_s12 = smov (!%p216_p1, %s469_s12), 1 }
  0x22   : > { %s395_s26 = sshll.u32 %s573_s12, 4  ;;  %s387_s27 = sshll.u32 %s573_s12, 3 }
  0x23   : > { %s223_s30 = scalar_lea.vmem %s563_s1, %s395_s26  ;;  %s230_s6 = scalar_lea.vmem %s564_s2, %s387_s27 }
  0x24   : > { %s235_s9 = scalar_lea.vmem %s565_s3, %s395_s26  ;;  %v242_v0 = vld [vmem:[%s223_s30] sm:$0xff]  ;;  %v390_v1 = vld [vmem:[%s223_s30 + $0x8] sm:$0xff] }
  0x25   : > { %v245_v2 = vld [vmem:[%s230_s6] sm:$0xff]  ;;  %v262_v3 = vstv %s259_s24  ;;  %v247_v4 = vsub.f32 %v390_v1, %v242_v0 }
  0x26   : > { %vm246_vm0 = vcmp.ne.s32.totalorder %v245_v2, 0  ;;  %v261_v5 = vstv %s391_s25 }
  0x27   : > { %v263_v6 = vsel %vm246_vm0, %v261_v5, %v262_v3  ;;  %v248_v7 = vand.u32 2147483647, %v247_v4  ;;  %v255_v12 = vsub.f32 0.0, %v247_v4 }
  0x28   : > { %392 = vst [vmem:[%s235_s9 + $0x8] sm:$0xff] %v263_v6 }
  0x29   : > { %v249_v8 = vsub.f32 0.0, %v248_v7  ;;  %v256_v13 = vsel %vm246_vm0, %v255_v12, %v247_v4 }
  0x2a   : > { %v257_v14 = vmax.f32 %v256_v13, 0.0 }
  0x2b   : > { %v250_v9 = vmul.f32 1.442695, %v249_v8 }
  0x2d   : > { %432 = vpow2.f32 %v250_v9 }
  0x37   : > { %v433_v10 = vpop.eup %432 }
  0x38   : > { %v252_v11 = vadd.f32 1.0, %v433_v10 }
  0x3a   : > { %434 = vlog2.f32 %v252_v11 }
  0x44   : > { %v435_v15 = vpop.eup %434 }
  0x45   : > { %v254_v16 = vmul.f32 0.6931472, %v435_v15 }
  0x47   : > { %v258_v17 = vadd.f32 %v257_v14, %v254_v16 }
  0x49   : > { %v265_v18 = vmul.f32 %v263_v6, %v258_v17 }
  0x4b   : > { %276 = vst [vmem:[%s235_s9] sm:$0xff] %v265_v18 }
  0x4c PF: > { %s14_s14 = sadd.s32 1, %s477_s14   ;;  %s568_s12 = smov %s473_s13 }
  0x4d   : > { %p11_p2 = scmp.ge.s32.totalorder %s14_s14, 4   ;;  %s569_s13 = smov %s571_s16 }
  0x4f   :  { %13 = sbr.rel (!%p11_p2) target bundleno = 2 (0x2), region = 80 }
  0x56   :  { %302 = vsyncpa [#allocation5], 1 }
  0x57   :  { %304 = vsyncpa [#allocation5 + $0x1], 1 }

</bundles_post_ra>
